<compile_context>
chip_gen: v7x
topology: tpu7x:2x2x1
jax: 0.10.0
libtpu: 0.0.40
codegen_flags: <defaults>
</compile_context>

<pallas_src>
import math

import numpy as np

import jax
import jax.numpy as jnp
from jax.experimental import pallas as pl
from jax.experimental.pallas import tpu as pltpu


# ----------------------------------------------------------------------------------
# Hamilton product structure:  A[p, qo, qi] = coefficient of w_p * x_qi in y_qo
# (w = wr + wi i + wj j + wk k multiplied on the left of x).
# ----------------------------------------------------------------------------------
_HAMILTON = np.array(
    [
        [[1, 0, 0, 0], [0, 1, 0, 0], [0, 0, 1, 0], [0, 0, 0, 1]],        # w_r
        [[0, -1, 0, 0], [1, 0, 0, 0], [0, 0, 0, -1], [0, 0, 1, 0]],      # w_i
        [[0, 0, -1, 0], [0, 0, 0, 1], [1, 0, 0, 0], [0, -1, 0, 0]],      # w_j
        [[0, 0, 0, -1], [0, 0, -1, 0], [0, 1, 0, 0], [1, 0, 0, 0]],      # w_k
    ],
    dtype=np.float32,
)


def make_qconv1x1_weight(key, c_in, c_out):
    """QConv2D(c_in, c_out, kernel_size=1, bias=False) component weights.

    Returns w_comp of shape (4, c_out, c_in): the r/i/j/k quaternion components.
    """
    keys = jax.random.split(key, 4)
    scale = 1.0 / math.sqrt(c_in)
    return jnp.stack(
        [scale * jax.random.normal(k, (c_out, c_in), jnp.float32) for k in keys], axis=0
    )


def assemble_hamilton_weight(w_comp):
    """(4, C_out, C_in) component weights -> dense (4*C_out, 4*C_in) matrix.

    Row index = o*4 + q_out, column index = c*4 + q_in, matching the natural
    contiguous flattening of [B, C, 4, H, W] -> [B, C*4, H*W].
    """
    a = jnp.asarray(_HAMILTON)                       # (4, qo, qi)
    c_out, c_in = w_comp.shape[1], w_comp.shape[2]
    w = jnp.einsum("poc,pab->oacb", w_comp, a)       # (C_out, 4, C_in, 4)
    return w.reshape(4 * c_out, 4 * c_in)


# ----------------------------------------------------------------------------------
# Pallas kernel: fused concat + 1x1 quaternion conv (single fat-K matmul per step)
# ----------------------------------------------------------------------------------
def _make_concat_qconv1x1_kernel(k_sizes):
    """k_sizes[i] = 4 * C_i (real channel count) of the i-th input tensor."""
    offsets = [0]
    for k in k_sizes:
        offsets.append(offsets[-1] + k)
    n_in = len(k_sizes)

    def kernel(*refs):
        x_refs = refs[:n_in]              # each (1, K_i, TP) in VMEM
        w_ref = refs[n_in]                # (N_out, K_total), constant index -> DMA elided
        o_ref = refs[n_in + 1]            # (1, N_out, TP)
        xcat_ref = refs[n_in + 2]         # VMEM scratch (K_total, TP)

        # Fused concat: stage each input tile at its static sublane offset.
        # Offsets / sizes are multiples of 8 for f32 (multiples of 16 for bf16),
        # so these are aligned vst with no layout fixup.
        for i in range(n_in):
            xcat_ref[offsets[i]:offsets[i] + k_sizes[i], :] = x_refs[i][0]

        # One fat-K MXU matmul; result stored straight to the lane-dense output tile
        # (no live accumulator, no chained VPU adds, no vreg spills).
        o_ref[0] = jnp.dot(
            w_ref[...], xcat_ref[...], preferred_element_type=jnp.float32
        ).astype(o_ref.dtype)

    return kernel


def _round_up(x, m):
    return ((x + m - 1) // m) * m


def _choose_col_tile(hw, k_total, n_out, dtype_bytes, batch, budget_bytes=12 << 20):
    """Lane-dense tile of the H*W axis, derived from a VMEM byte budget.

    Per lane column the working set is: double-buffered inputs (k_total) +
    double-buffered output (n_out) + the staging scratch (k_total).  The grid uses
    pl.cdiv, so tp never has to divide hw and there is no tp=hw fallback that could
    exceed v7x's 64 MiB VMEM.
    """
    hw_pad = _round_up(hw, 128)
    per_col = dtype_bytes * (3 * k_total + 2 * n_out)
    budget_tp = max(128, ((budget_bytes // per_col) // 128) * 128)
    tp = min(hw_pad, 2048, budget_tp)

    def steps(t):
        return batch * pl.cdiv(hw, t)

    # Keep tiles lane-rich (>=512) -- the mem-bound sweet spot -- but make sure the
    # grid has enough parallel steps to pipeline DMAs and feed both v7x TensorCores.
    while tp > 512 and steps(tp) < 8:
        tp = max(512, ((tp // 2) // 128) * 128)
    while tp > 128 and steps(tp) < 4:
        tp = max(128, ((tp // 2) // 128) * 128)
    return tp


def quaternion_concat_forward(inputs, w_full=None, target_channels=None, reduce=True):
    """Pallas equivalent of QuaternionConcat.forward.

    inputs: list of [B, C_i, 4, H, W] arrays.  Returns [B, C', 4, H, W].
    Works for f32 or bf16 activations/weights (f32 MXU accumulation either way).
    """
    assert all(x.shape[2] == 4 for x in inputs), "All inputs must have quaternion dim"
    if not reduce:
        # Pure data movement; no compute to put on the MXU/VPU — leave to XLA.
        return jnp.concatenate(inputs, axis=1)

    B, _, _, H, W = inputs[0].shape
    hw = H * W
    k_sizes = [4 * x.shape[1] for x in inputs]      # real channels per input
    k_total = sum(k_sizes)
    n_out = 4 * target_channels
    assert w_full.shape == (n_out, k_total)

    dtype = inputs[0].dtype
    dtype_bytes = dtype.itemsize

    # Free reshapes (contiguous dim merges): [B, C_i, 4, H, W] -> [B, 4*C_i, H*W]
    xs = [x.reshape(B, k, hw) for x, k in zip(inputs, k_sizes)]

    tp = _choose_col_tile(hw, k_total, n_out, dtype_bytes, B)
    num_p = pl.cdiv(hw, tp)
    grid = (num_p, B)                                # larger (spatial) axis first

    in_specs = [pl.BlockSpec((1, k, tp), lambda p, b: (b, 0, p)) for k in k_sizes]
    in_specs.append(pl.BlockSpec((n_out, k_total), lambda p, b: (0, 0)))   # whole weight
    out_spec = pl.BlockSpec((1, n_out, tp), lambda p, b: (b, 0, p))

    # Explicit scoped-VMEM limit from the per-step working set (v5e default is 16 MiB).
    block_bytes = dtype_bytes * tp * (3 * k_total + 2 * n_out)
    weight_bytes = 2 * dtype_bytes * n_out * k_total
    vmem_limit = int(min(60 << 20, max(4 << 20, 2 * (block_bytes + weight_bytes) + (1 << 20))))

    cost = pl.CostEstimate(
        flops=2 * B * n_out * k_total * hw,
        transcendentals=0,
        bytes_accessed=dtype_bytes * (B * hw * (k_total + n_out) + n_out * k_total),
    )

    out = pl.pallas_call(
        _make_concat_qconv1x1_kernel(k_sizes),
        out_shape=jax.ShapeDtypeStruct((B, n_out, hw), dtype),
        grid=grid,
        in_specs=in_specs,
        out_specs=out_spec,
        scratch_shapes=[pltpu.VMEM((k_total, tp), dtype)],
        compiler_params=pltpu.CompilerParams(
            dimension_semantics=("parallel", "parallel"),
            vmem_limit_bytes=vmem_limit,
        ),
        cost_estimate=cost,
    )(*xs, w_full)

    return out.reshape(B, target_channels, 4, H, W)


# ----------------------------------------------------------------------------------
# Plain-JAX reference (independent Hamilton-product formulation) for validation
# ----------------------------------------------------------------------------------
def quaternion_concat_reference(inputs, w_comp):
    xcat = jnp.concatenate(inputs, axis=1)          # (B, C_in, 4, H, W)
    a = jnp.asarray(_HAMILTON)                      # (p, qo, qi)
    return jnp.einsum(
        "puv,poc,ncvhw->nouhw", a, w_comp, xcat,
        precision=jax.lax.Precision.HIGHEST,
    )


# ----------------------------------------------------------------------------------
if __name__ == "__main__":
    key = jax.random.PRNGKey(0)

    B, H, W = 2, 16, 16
    target_channels = 8                     # output quaternion channels (mult. of 4)
    in_quat_channels = [16, 8, 4, 4]        # sums to target_channels * 4 = 32

    keys = jax.random.split(key, len(in_quat_channels) + 1)
    inputs = [
        jax.random.normal(k, (B, c, 4, H, W), jnp.float32)
        for k, c in zip(keys[:-1], in_quat_channels)
    ]

    w_comp = make_qconv1x1_weight(keys[-1], sum(in_quat_channels), target_channels)
    w_full = assemble_hamilton_weight(w_comp)       # (4*C_out, 4*C_in_total)

    out = quaternion_concat_forward(
        inputs, w_full=w_full, target_channels=target_channels, reduce=True)
    out = jax.block_until_ready(out)

    assert out.shape == (B, target_channels, 4, H, W), out.shape

    ref = quaternion_concat_reference(inputs, w_comp)
    err = float(jnp.max(jnp.abs(out - ref)))
    assert jnp.allclose(out, ref, atol=2e-3, rtol=1e-3), err

    print("KERNEL_OK")
</pallas_src>

<mosaic_0001>
module attributes {stable_mosaic.version = 11 : i64} {
  func.func @kernel(%arg0: i32, %arg1: i32, %arg2: memref<1x64x128xf32, #tpu.memory_space<vmem>>, %arg3: memref<1x32x128xf32, #tpu.memory_space<vmem>>, %arg4: memref<1x16x128xf32, #tpu.memory_space<vmem>>, %arg5: memref<1x16x128xf32, #tpu.memory_space<vmem>>, %arg6: memref<32x128xf32, #tpu.memory_space<vmem>>, %arg7: memref<1x32x128xf32, #tpu.memory_space<vmem>>, %arg8: memref<128x128xf32, #tpu.memory_space<vmem>>) attributes {dimension_semantics = [#tpu.dimension_semantics<parallel>, #tpu.dimension_semantics<parallel>], iteration_bounds = array<i64: 2, 2>, scalar_prefetch = 0 : i64, scratch_operands = 1 : i64, tpu.core_type = #tpu.core_type<tc>, window_params = [{transform_indices = @transform_0, window_bounds = array<i64: 1, 64, 128>}, {transform_indices = @transform_1, window_bounds = array<i64: 1, 32, 128>}, {transform_indices = @transform_2, window_bounds = array<i64: 1, 16, 128>}, {transform_indices = @transform_3, window_bounds = array<i64: 1, 16, 128>}, {pipeline_mode = #tpu.pipeline_mode<synchronous>, transform_indices = @transform_4, window_bounds = array<i64: 32, 128>}, {transform_indices = @transform_5, window_bounds = array<i64: 1, 32, 128>}]} {
    %c0 = arith.constant 0 : index
    %c0_0 = arith.constant 0 : index
    %c0_1 = arith.constant 0 : index
    %0 = vector.load %arg2[%c0, %c0_0, %c0_1] : memref<1x64x128xf32, #tpu.memory_space<vmem>>, vector<1x64x128xf32>
    %1 = vector.shape_cast %0 : vector<1x64x128xf32> to vector<64x128xf32>
    %c0_2 = arith.constant 0 : index
    %c0_3 = arith.constant 0 : index
    %2 = vector.load %arg8[%c0_2, %c0_3] : memref<128x128xf32, #tpu.memory_space<vmem>>, vector<64x128xf32>
    tpu.vector_store %arg8[%c0_2, %c0_3], %1 {strides = array<i32>} : memref<128x128xf32, #tpu.memory_space<vmem>>, vector<64x128xf32>,
    %c0_4 = arith.constant 0 : index
    %c0_5 = arith.constant 0 : index
    %c0_6 = arith.constant 0 : index
    %3 = vector.load %arg3[%c0_4, %c0_5, %c0_6] : memref<1x32x128xf32, #tpu.memory_space<vmem>>, vector<1x32x128xf32>
    %4 = vector.shape_cast %3 : vector<1x32x128xf32> to vector<32x128xf32>
    %c64 = arith.constant 64 : index
    %c0_7 = arith.constant 0 : index
    %5 = vector.load %arg8[%c64, %c0_7] : memref<128x128xf32, #tpu.memory_space<vmem>>, vector<32x128xf32>
    tpu.vector_store %arg8[%c64, %c0_7], %4 {strides = array<i32>} : memref<128x128xf32, #tpu.memory_space<vmem>>, vector<32x128xf32>,
    %c0_8 = arith.constant 0 : index
    %c0_9 = arith.constant 0 : index
    %c0_10 = arith.constant 0 : index
    %6 = vector.load %arg4[%c0_8, %c0_9, %c0_10] : memref<1x16x128xf32, #tpu.memory_space<vmem>>, vector<1x16x128xf32>
    %7 = vector.shape_cast %6 : vector<1x16x128xf32> to vector<16x128xf32>
    %c96 = arith.constant 96 : index
    %c0_11 = arith.constant 0 : index
    %8 = vector.load %arg8[%c96, %c0_11] : memref<128x128xf32, #tpu.memory_space<vmem>>, vector<16x128xf32>
    tpu.vector_store %arg8[%c96, %c0_11], %7 {strides = array<i32>} : memref<128x128xf32, #tpu.memory_space<vmem>>, vector<16x128xf32>,
    %c0_12 = arith.constant 0 : index
    %c0_13 = arith.constant 0 : index
    %c0_14 = arith.constant 0 : index
    %9 = vector.load %arg5[%c0_12, %c0_13, %c0_14] : memref<1x16x128xf32, #tpu.memory_space<vmem>>, vector<1x16x128xf32>
    %10 = vector.shape_cast %9 : vector<1x16x128xf32> to vector<16x128xf32>
    %c112 = arith.constant 112 : index
    %c0_15 = arith.constant 0 : index
    %11 = vector.load %arg8[%c112, %c0_15] : memref<128x128xf32, #tpu.memory_space<vmem>>, vector<16x128xf32>
    tpu.vector_store %arg8[%c112, %c0_15], %10 {strides = array<i32>} : memref<128x128xf32, #tpu.memory_space<vmem>>, vector<16x128xf32>,
    %c0_16 = arith.constant 0 : index
    %c0_17 = arith.constant 0 : index
    %12 = vector.load %arg6[%c0_16, %c0_17] : memref<32x128xf32, #tpu.memory_space<vmem>>, vector<32x128xf32>
    %c0_18 = arith.constant 0 : index
    %c0_19 = arith.constant 0 : index
    %13 = vector.load %arg8[%c0_18, %c0_19] : memref<128x128xf32, #tpu.memory_space<vmem>>, vector<128x128xf32>
    %cst = arith.constant dense<0.000000e+00> : vector<32x128xf32>
    %14 = tpu.matmul %12, %13, %cst {dimension_numbers = #tpu.dot_dimension_numbers<[1], [0], [0], [1], [0, 0, 1, 1], [], []>} : vector<32x128xf32>, vector<128x128xf32>, vector<32x128xf32> -> vector<32x128xf32>
    %c0_20 = arith.constant 0 : index
    %c0_21 = arith.constant 0 : index
    %c0_22 = arith.constant 0 : index
    %15 = vector.load %arg7[%c0_20, %c0_21, %c0_22] : memref<1x32x128xf32, #tpu.memory_space<vmem>>, vector<1x32x128xf32>
    %16 = vector.shape_cast %15 : vector<1x32x128xf32> to vector<32x128xf32>
    %17 = vector.shape_cast %14 : vector<32x128xf32> to vector<1x32x128xf32>
    tpu.vector_store %arg7[%c0_20, %c0_21, %c0_22], %17 {strides = array<i32>} : memref<1x32x128xf32, #tpu.memory_space<vmem>>, vector<1x32x128xf32>,
    return
  }
  func.func @transform_0(%arg0: i32, %arg1: i32) -> (i32, i32, i32) {
    %c0_i32 = arith.constant 0 : i32
    %c0_i32_0 = arith.constant 0 : i32
    return %arg1, %c0_i32, %arg0 : i32, i32, i32
  }
  func.func @transform_1(%arg0: i32, %arg1: i32) -> (i32, i32, i32) {
    %c0_i32 = arith.constant 0 : i32
    %c0_i32_0 = arith.constant 0 : i32
    return %arg1, %c0_i32, %arg0 : i32, i32, i32
  }
  func.func @transform_2(%arg0: i32, %arg1: i32) -> (i32, i32, i32) {
    %c0_i32 = arith.constant 0 : i32
    %c0_i32_0 = arith.constant 0 : i32
    return %arg1, %c0_i32, %arg0 : i32, i32, i32
  }
  func.func @transform_3(%arg0: i32, %arg1: i32) -> (i32, i32, i32) {
    %c0_i32 = arith.constant 0 : i32
    %c0_i32_0 = arith.constant 0 : i32
    return %arg1, %c0_i32, %arg0 : i32, i32, i32
  }
  func.func @transform_4(%arg0: i32, %arg1: i32) -> (i32, i32) {
    %c0_i32 = arith.constant 0 : i32
    %c0_i32_0 = arith.constant 0 : i32
    %c0_i32_1 = arith.constant 0 : i32
    return %c0_i32, %c0_i32_0 : i32, i32
  }
  func.func @transform_5(%arg0: i32, %arg1: i32) -> (i32, i32, i32) {
    %c0_i32 = arith.constant 0 : i32
    %c0_i32_0 = arith.constant 0 : i32
    return %arg1, %c0_i32, %arg0 : i32, i32, i32
  }
}

</mosaic_0001>

<bundles_post_ra>
// kernel: tpu_custom_call.1
= control target key start
LH: loop header
LB: loop body
LE: loop exit
PB: predicated region body
PF: predicated region fallthrough
CT: control target
= control target key end

     0   :  { %s1681_s0 = inlined_call_operand.hbm [shape: f32[2,64,256], index: 0, kind: input, shape index: {}]   ;;  %s1682_s1 = inlined_call_operand.hbm [shape: f32[2,32,256], index: 1, kind: input, shape index: {}]   ;;  %s1683_s2 = inlined_call_operand.hbm [shape: f32[2,16,256], index: 2, kind: input, shape index: {}]   ;;  %s1684_s3 = inlined_call_operand.hbm [shape: f32[2,16,256], index: 3, kind: input, shape index: {}]   ;;  %s1685_s4 = inlined_call_operand.hbm [shape: f32[32,128], index: 4, kind: input, shape index: {}]   ;;  %s1686_s5 = inlined_call_operand.hbm [shape: f32[2,32,256], index: 5, kind: output, shape index: {}]  }
   0x1   :  { %1704 = sst [smem:[#allocation26_spill]] %s1682_s1 }
   0x2   :  { %1705 = sst [smem:[#allocation27_spill]] %s1685_s4 }
   0x3   :  { %1706 = sst [smem:[#allocation28_spill]] %s1686_s5 }
   0x4   :  { %10 = vsyncpa [#allocation4], 0 }
   0x5   :  { %12 = vsyncpa [#allocation4 + $0x1], 0 }
   0x6   :  { %13 = vsyncpa [#allocation7], 0 }
   0x7   :  { %15 = vsyncpa [#allocation7 + $0x1], 0 }
   0x8   :  { %16 = vsyncpa [#allocation10], 0 }
   0x9   :  { %18 = vsyncpa [#allocation10 + $0x1], 0 }
   0xa   :  { %19 = vsyncpa [#allocation5], 0 }
   0xb   :  { %21 = vsyncpa [#allocation5 + $0x1], 0  ;;  %s1272_s18 = smov 0   ;;  %s1274_s19 = smov 0  }
   0xc   :  { %s1276_s20 = smov 0   ;;  %s1278_s21 = smov 0  }
   0xd   :  { %s1280_s22 = smov 0   ;;  %s1282_s23 = smov 0  }
   0xe   :  { %s1284_s24 = smov 0   ;;  %s1286_s25 = smov 0  }
   0xf LB: > { %1707 = sst [smem:[#allocation18_spill]] %s1200_s18  ;;  %s1313_s26 = sadd.s32 4294967295, %s1228_s25   ;;  %s1228_s25 = sphi %s1286_s25, %s27_s25   ;;  %s1224_s24 = sphi %s1284_s24, %s1752_s24   ;;  %s1220_s23 = sphi %s1282_s23, %s1751_s23   ;;  %s1216_s22 = sphi %s1280_s22, %s1750_s22   ;;  %s1212_s21 = sphi %s1278_s21, %s1749_s21   ;;  %s1208_s20 = sphi %s1276_s20, %s1744_s20   ;;  %s1204_s19 = sphi %s1274_s19, %s1748_s19   ;;  %s1200_s18 = sphi %s1272_s18, %s1747_s18  }
  0x10   : > { %1708 = sst [smem:[#allocation19_spill]] %s1208_s20  ;;  %s726_s27 = sadd.s32 4294967294, %s1228_s25  }
  0x11   : > { %1709 = sst [smem:[#allocation20_spill]] %s1216_s22  ;;  %p55_p0 = scmp.ne.s32.totalorder %s1208_s20, %s1204_s19 }
  0x12   : > { %p56_p1 = scmp.eq.s32.totalorder %s1228_s25, 0  ;;  %p61_p2 = scmp.ne.s32.totalorder %s1204_s19, %s1200_s18 }
  0x13   : > { %p1687_p3 = scmp.eq.s32.totalorder %s1313_s26, 0  ;;  %p192_p4 = scmp.eq.s32.totalorder %s1313_s26, 3 }
  0x14   : > { %p1324_p5 = por %p56_p1, %p55_p0  ;;  %p198_p6 = scmp.eq.s32.totalorder %s726_s27, 3 }
  0x15   : > { %p1330_p7 = por %p1687_p3, %p61_p2  ;;  %p1334_p8 = por %p192_p4, %p55_p0 }
  0x16   : > { %p1338_p9 = por %p198_p6, %p61_p2  ;;  %p727_p10 = scmp.ge.s32.totalorder %s1228_s25, 1 }
  0x17   : > { %s1711_s30 = scalar_select %p1330_p7, 1, 0 }
  0x18   : > { %s1712_s6 = scalar_select %p1334_p8, 1, 0 }
  0x19   : > { %s1714_s7 = scalar_select %p1338_p9, 1, 0 }
  0x1a   : > { %1713 = sst [smem:[#allocation21_spill]] %s1712_s6  ;;  %p205_p11 = scmp.lt.s32.totalorder %s1228_s25, 5 }
  0x1b   : > { %1715 = sst [smem:[#allocation22_spill]] %s1714_s7  ;;  %s1230_s9 = smov [#allocation11]  }
  0x1c   : > { %p1344_p12 = pnand %p727_p10, %p205_p11  ;;  %s217_s10 = sshll.u32 %s1230_s9, 4  ;;  %s218_s10 = int_to_ptr.vmem [resolvable:$true] %s217_s10 }
  0x1d   : > { %p896_p0 = scmp.lt.s32.totalorder %s1228_s25, 4  ;;  %s1719_s4 = sld [smem:[#allocation27_spill]] }
  0x1e   : > { %s1716_s8 = scalar_select %p1344_p12, 1, 0 }
  0x1f   : > { %p874_p13 = pneg %p1344_p12  ;;  %p1359_p2 = pnand %p896_p0, %p1324_p5 }
  0x21   : > { %p1353_p1 = pnand %p874_p13, %p1687_p3 }
  0x22   : > { %s1718_s12 = scalar_select %p1359_p2, 1, 0 }
  0x23   : > { %s970_s15 = scalar_lea.hbm %s1719_s4, 512  ;;  %p972_p6 = pneg %p1353_p1 }
  0x24   : > { %p971_p4 = scmp.ne.s32.totalorder %s1719_s4, %s970_s15  ;;  %p977_p13 = scmp.lt.u32.totalorder %s970_s15, %s1719_s4 }
  0x26   : > { %p973_p10 = pnand %p972_p6, %p971_p4 }
  0x28   : > { %p974_p11 = pneg %p973_p10 }
  0x2a   : > { %p979_p5 = pnand %p977_p13, %p974_p11 }
  0x2c   : > { %982 = shalt.err (!%p979_p5)
}
  0x2d   : > { %s983_s29 = scalar_lea.vmem %s218_s10, 512  ;;  %p991_p8 = scmp.lt.s32.totalorder %s218_s10, %s218_s10 }
  0x2e   : > { %p984_p0 = scmp.ne.s32.totalorder %s218_s10, %s983_s29  ;;  %p992_p7 = scmp.lt.s32.totalorder %s983_s29, %s983_s29 }
  0x30   : > { %p986_p3 = pnand %p984_p0, %p972_p6  ;;  %p993_p12 = por %p992_p7, %p991_p8 }
  0x32   : > { %p987_p9 = pneg %p986_p3 }
  0x34   : > { %p994_p2 = pnand %p993_p12, %p987_p9 }
  0x36   : > { %997 = shalt.err (!%p994_p2)
}
  0x37   : > { %s1692_s13 = smov 128   ;;  %s1694_s14 = smov 8  }
  0x38   : > { %877 = dma.hbm_to_vmem [thread:$0]  (!%p1353_p1), %s1719_s4, 512, %s218_s10, [#allocation10], %s1692_s13, %s1692_s13, %s1694_s14  }
  0x39   : > { %s36_s17 = sadd.s32 1, %s1220_s23  ;;  %s39_s27 = sadd.s32 1, %s1224_s24 }
  0x3a   : > { %p37_p3 = scmp.ge.s32.totalorder %s36_s17, 2  ;;  %s1385_s9 = sand.u32 1, %s1208_s20  }
  0x3b   : > { %s733_s28 = sshll.u32 %s1385_s9, 5  ;;  %s734_s15 = sshll.u32 %s1220_s23, 3 }
  0x3c   : > { %s1754_s17 = smov (%p37_p3, %s36_s17), 0  ;;  %s1756_s27 = smov (!%p37_p3, %s39_s27), %s1224_s24 }
  0x3d   : > { %1720 = sst [smem:[#allocation23_spill]] %s1754_s17  ;;  %s43_s11 = ssub.s32 %s1220_s23, %s1754_s17 }
  0x3e   : > { %p41_p7 = scmp.ge.s32.totalorder %s1756_s27, 2  ;;  %s262_s10 = sadd.s32 %s1224_s24, %s734_s15 }
  0x3f   : > { %s735_s13 = sshll.u32 %s262_s10, 7  ;;  %s1722_s1 = sld [smem:[#allocation26_spill]] }
  0x40   : > { %s1758_s27 = smov (%p41_p7, %s1756_s27), 0  ;;  %s257_s29 = scalar_lea.vmem [#allocation6], %s733_s28 }
  0x41   : > { %1721 = sst [smem:[#allocation24_spill]] %s1758_s27  ;;  %s44_s16 = ssub.s32 %s1224_s24, %s1758_s27 }
  0x42   : > { %s45_s14 = sor.u32 %s44_s16, %s43_s11  ;;  %s265_s17 = sshll.u32 %s257_s29, 4  ;;  %s1405_s17 = int_to_ptr.vmem [resolvable:$true] %s265_s17 }
  0x43   : > { %p46_p8 = scmp.eq.s32.totalorder %s45_s14, 0  ;;  %s1723_s5 = sadd.s32 1, %s1208_s20 }
  0x44   : > { %s1725_s15 = sand.u32 1, %s1228_s25   ;;  %p1726_p12 = scmp.ne.s32.totalorder %s1718_s12, 0 }
  0x45   : > { %s1403_s18 = scalar_lea.hbm %s1722_s1, %s735_s13  ;;  %s1414_s10 = scalar_lea.sflag [#allocation7], %s1725_s15 }
  0x46   : > { %s1410_s6 = scalar_select %p46_p8, %s1208_s20, %s1723_s5  }
  0x47   : > { %s998_s11 = scalar_lea.hbm %s1403_s18, 512  ;;  %p1420_p1 = pneg %p1726_p12 }
  0x48   : > { %1724 = sst [smem:[#allocation25_spill]] %s1410_s6  ;;  %p999_p9 = scmp.ne.s32.totalorder %s1403_s18, %s998_s11 }
  0x49   : > { %s1003_s13 = scalar_lea.hbm %s1722_s1, 2048  ;;  %p1004_p6 = scmp.lt.u32.totalorder %s1403_s18, %s1722_s1 }
  0x4a   : > { %p1001_p2 = pnand %p1420_p1, %p999_p9  ;;  %p1005_p10 = scmp.lt.u32.totalorder %s1003_s13, %s998_s11 }
  0x4b   : > { %p1007_p13 = scmp.lt.u32.totalorder %s998_s11, %s1403_s18 }
  0x4c   : > { %p1002_p4 = pneg %p1001_p2  ;;  %p1006_p11 = por %p1005_p10, %p1004_p6 }
  0x4e   : > { %p1008_p5 = por %p1007_p13, %p1006_p11 }
  0x50   : > { %p1009_p0 = pnand %p1008_p5, %p1002_p4 }
  0x52   : > { %1012 = shalt.err (!%p1009_p0)
}
  0x53   : > { %s1013_s29 = scalar_lea.vmem %s1405_s17, 512  ;;  %s1233_s16 = smov [#allocation6]  }
  0x54   : > { %p1014_p3 = scmp.ne.s32.totalorder %s1405_s17, %s1013_s29  ;;  %s1018_s15 = sshll.u32 %s1233_s16, 4  ;;  %s1019_s15 = int_to_ptr.vmem [resolvable:$false] %s1018_s15 }
  0x55   : > { %s1020_s28 = scalar_lea.vmem %s1019_s15, 1024  ;;  %p1021_p9 = scmp.lt.s32.totalorder %s1405_s17, %s1019_s15 }
  0x56   : > { %p1016_p7 = pnand %p1014_p3, %p1420_p1  ;;  %p1022_p2 = scmp.lt.s32.totalorder %s1020_s28, %s1013_s29 }
  0x58   : > { %p1017_p8 = pneg %p1016_p7  ;;  %p1023_p6 = por %p1022_p2, %p1021_p9 }
  0x5a   : > { %p1024_p10 = pnand %p1023_p6, %p1017_p8 }
  0x5c   : > { %1027 = shalt.err (!%p1024_p10)
}
  0x5d   : > { %s1234_s11 = smov 256   ;;  %s1728_s7 = smov 8  }
  0x5e   : > { %s1729_s13 = smov 128   ;;  %s730_s5 = sshll.u32 %s1385_s9, 6 }
  0x5f   : > { %884 = dma.hbm_to_vmem [thread:$0]  (!%p1726_p12), %s1403_s18, 512, %s1405_s17, %s1414_s10, %s1234_s11, %s1729_s13, %s1728_s7  }
  0x60   : > { %s731_s14 = sshll.u32 %s1220_s23, 4  ;;  %s235_s16 = scalar_lea.vmem [#allocation3], %s730_s5 }
  0x61   : > { %s240_s29 = sadd.s32 %s1224_s24, %s731_s14  ;;  %s243_s15 = sshll.u32 %s235_s16, 4  ;;  %s1450_s15 = int_to_ptr.vmem [resolvable:$true] %s243_s15 }
  0x62   : > { %s732_s28 = sshll.u32 %s240_s29, 7  ;;  %s736_s20 = sshll.u32 %s1385_s9, 4 }
  0x63   : > { %s1455_s6 = scalar_lea.hbm %s1681_s0, %s732_s28  ;;  %s232_s22 = scalar_lea.sflag [#allocation4], %s1385_s9 }
  0x64   : > { %s1028_s18 = scalar_lea.hbm %s1455_s6, 1024  ;;  %s1033_s14 = scalar_lea.hbm %s1681_s0, 4096 }
  0x65   : > { %p1029_p4 = scmp.ne.s32.totalorder %s1455_s6, %s1028_s18  ;;  %p1034_p5 = scmp.lt.u32.totalorder %s1455_s6, %s1681_s0 }
  0x66   : > { %p1035_p0 = scmp.lt.u32.totalorder %s1033_s14, %s1028_s18  ;;  %p1037_p7 = scmp.lt.u32.totalorder %s1028_s18, %s1455_s6 }
  0x67   : > { %p1031_p11 = pnand %p1029_p4, %p1420_p1 }
  0x68   : > { %p1036_p3 = por %p1035_p0, %p1034_p5 }
  0x69   : > { %p1032_p13 = pneg %p1031_p11 }
  0x6a   : > { %p1038_p8 = por %p1037_p7, %p1036_p3 }
  0x6c   : > { %p1039_p9 = pnand %p1038_p8, %p1032_p13 }
  0x6e   : > { %1042 = shalt.err (!%p1039_p9)
}
  0x6f   : > { %s1043_s1 = scalar_lea.vmem %s1450_s15, 1024  ;;  %s1235_s27 = smov [#allocation3]  }
  0x70   : > { %p1044_p2 = scmp.ne.s32.totalorder %s1450_s15, %s1043_s1  ;;  %s1048_s28 = sshll.u32 %s1235_s27, 4  ;;  %s1049_s28 = int_to_ptr.vmem [resolvable:$false] %s1048_s28 }
  0x71   : > { %s1050_s17 = scalar_lea.vmem %s1049_s28, 2048  ;;  %p1051_p4 = scmp.lt.s32.totalorder %s1450_s15, %s1049_s28 }
  0x72   : > { %p1046_p6 = pnand %p1044_p2, %p1420_p1  ;;  %p1052_p11 = scmp.lt.s32.totalorder %s1050_s17, %s1043_s1 }
  0x74   : > { %p1047_p10 = pneg %p1046_p6  ;;  %p1053_p5 = por %p1052_p11, %p1051_p4 }
  0x76   : > { %p1054_p0 = pnand %p1053_p5, %p1047_p10 }
  0x78   : > { %1057 = shalt.err (!%p1054_p0)
}
  0x79   : > { %881 = dma.hbm_to_vmem [thread:$0]  (!%p1726_p12), %s1455_s6, 1024, %s1450_s15, %s232_s22, %s1234_s11, %s1729_s13, %s1728_s7  }
  0x7a   : > { %s737_s18 = sshll.u32 %s1220_s23, 2  ;;  %s279_s14 = scalar_lea.vmem [#allocation8], %s736_s20 }
  0x7b   : > { %s1487_s5 = sadd.s32 %s1224_s24, %s737_s18  ;;  %s287_s29 = sshll.u32 %s279_s14, 4  ;;  %s1492_s29 = int_to_ptr.vmem [resolvable:$true] %s287_s29 }
  0x7c   : > { %s738_s16 = sshll.u32 %s1487_s5, 7  ;;  %s1063_s17 = scalar_lea.hbm %s1683_s2, 1024 }
  0x7d   : > { %s1499_s28 = scalar_lea.hbm %s1683_s2, %s738_s16 }
  0x7e   : > { %s1058_s22 = scalar_lea.hbm %s1499_s28, 256  ;;  %p1064_p8 = scmp.lt.u32.totalorder %s1499_s28, %s1683_s2 }
  0x7f   : > { %p1059_p13 = scmp.ne.s32.totalorder %s1499_s28, %s1058_s22  ;;  %p1065_p9 = scmp.lt.u32.totalorder %s1063_s17, %s1058_s22 }
  0x80   : > { %p1067_p6 = scmp.lt.u32.totalorder %s1058_s22, %s1499_s28 }
  0x81   : > { %p1061_p3 = pnand %p1059_p13, %p1420_p1  ;;  %p1066_p2 = por %p1065_p9, %p1064_p8 }
  0x83   : > { %p1062_p7 = pneg %p1061_p3  ;;  %p1068_p10 = por %p1067_p6, %p1066_p2 }
  0x85   : > { %p1069_p4 = pnand %p1068_p10, %p1062_p7 }
  0x87   : > { %1072 = shalt.err (!%p1069_p4)
}
  0x88   : > { %s1073_s1 = scalar_lea.vmem %s1492_s29, 256  ;;  %s1236_s27 = smov [#allocation8]  }
  0x89   : > { %p1074_p11 = scmp.ne.s32.totalorder %s1492_s29, %s1073_s1  ;;  %s1078_s6 = sshll.u32 %s1236_s27, 4  ;;  %s1079_s6 = int_to_ptr.vmem [resolvable:$false] %s1078_s6 }
  0x8a   : > { %s1080_s15 = scalar_lea.vmem %s1079_s6, 512  ;;  %p1081_p13 = scmp.lt.s32.totalorder %s1492_s29, %s1079_s6 }
  0x8b   : > { %p1076_p5 = pnand %p1074_p11, %p1420_p1  ;;  %p1082_p3 = scmp.lt.s32.totalorder %s1080_s15, %s1073_s1 }
  0x8d   : > { %p1077_p0 = pneg %p1076_p5  ;;  %p1083_p8 = por %p1082_p3, %p1081_p13 }
  0x8f   : > { %p1084_p9 = pnand %p1083_p8, %p1077_p0 }
  0x91   : > { %1087 = shalt.err (!%p1084_p9)
}
  0x92   : > { %887 = dma.hbm_to_vmem [thread:$0]  (!%p1726_p12), %s1499_s28, 256, %s1492_s29, %s1414_s10, %s1234_s11, %s1729_s13, %s1728_s7  }
  0x93   : > { %s1531_s18 = scalar_lea.hbm %s1684_s3, %s738_s16  ;;  %s301_s14 = scalar_lea.vmem [#allocation9], %s736_s20 }
  0x94   : > { %s309_s1 = sshll.u32 %s301_s14, 4  ;;  %s1730_s27 = sand.u32 1, %s1228_s25   ;;  %s1535_s1 = int_to_ptr.vmem [resolvable:$true] %s309_s1 }
  0x95   : > { %s1539_s6 = scalar_lea.sflag [#allocation10], %s1730_s27  ;;  %s1088_s15 = scalar_lea.hbm %s1531_s18, 256 }
  0x96   : > { %p1089_p7 = scmp.ne.s32.totalorder %s1531_s18, %s1088_s15  ;;  %s1093_s9 = scalar_lea.hbm %s1684_s3, 1024 }
  0x97   : > { %p1094_p10 = scmp.lt.u32.totalorder %s1531_s18, %s1684_s3  ;;  %p1095_p4 = scmp.lt.u32.totalorder %s1093_s9, %s1088_s15 }
  0x98   : > { %p1091_p2 = pnand %p1089_p7, %p1420_p1  ;;  %p1097_p5 = scmp.lt.u32.totalorder %s1088_s15, %s1531_s18 }
  0x99   : > { %p1096_p11 = por %p1095_p4, %p1094_p10 }
  0x9a   : > { %p1092_p6 = pneg %p1091_p2 }
  0x9b   : > { %p1098_p0 = por %p1097_p5, %p1096_p11 }
  0x9d   : > { %p1099_p13 = pnand %p1098_p0, %p1092_p6 }
  0x9f   : > { %1102 = shalt.err (!%p1099_p13)
}
  0xa0   : > { %s1103_s20 = scalar_lea.vmem %s1535_s1, 256  ;;  %s1237_s28 = smov [#allocation9]  }
  0xa1   : > { %p1104_p3 = scmp.ne.s32.totalorder %s1535_s1, %s1103_s20  ;;  %s1108_s22 = sshll.u32 %s1237_s28, 4  ;;  %s1109_s22 = int_to_ptr.vmem [resolvable:$false] %s1108_s22 }
  0xa2   : > { %s1110_s17 = scalar_lea.vmem %s1109_s22, 512  ;;  %p1111_p7 = scmp.lt.s32.totalorder %s1535_s1, %s1109_s22 }
  0xa3   : > { %p1106_p8 = pnand %p1104_p3, %p1420_p1  ;;  %p1112_p2 = scmp.lt.s32.totalorder %s1110_s17, %s1103_s20 }
  0xa5   : > { %p1107_p9 = pneg %p1106_p8  ;;  %p1113_p10 = por %p1112_p2, %p1111_p7 }
  0xa7   : > { %p1114_p4 = pnand %p1113_p10, %p1107_p9 }
  0xa9   : > { %1117 = shalt.err (!%p1114_p4)
}
  0xaa   : > { %890 = dma.hbm_to_vmem [thread:$0]  (!%p1726_p12), %s1531_s18, 256, %s1535_s1, %s1539_s6, %s1234_s11, %s1729_s13, %s1728_s7  }
  0xab   : > { %p1731_p1 = scmp.ne.s32.totalorder %s1716_s8, 0 }
  0xac   : > { %s1569_s4 = sand.u32 (!%p1731_p1), 1, %s1204_s19   ;;  %p1732_p6 = scmp.ne.s32.totalorder (!%p1731_p1), %s1711_s30, 0 }
  0xad   : > { %321 = sbr.rel (%p1731_p1) target bundleno = 454 (0x1c6), region = 40  ;;  %s743_s14 = sshll.u32 (!%p1731_p1), %s1569_s4, 6 }
  0xae   : > { %s324_s27 = scalar_lea.sflag (!%p1731_p1), [#allocation4], %s1569_s4  ;;  %s1573_s15 = scalar_lea.vmem (!%p1731_p1), [#allocation3], %s743_s14 }
  0xb4   : > { %1179 = dma.done.wait (%p1732_p6), %s324_s27, 1024  }
  0xb5   : > { %1181 = vsyncadd (%p1732_p6), %s324_s27, 4294966272  ;;  %s332_s8 = sand.u32 1, %s1313_s26   ;;  %s744_s12 = sshll.u32 %s1569_s4, 5 }
  0xb6   : > { %s333_s11 = scalar_lea.sflag [#allocation7], %s332_s8  ;;  %s1583_s7 = scalar_lea.vmem [#allocation6], %s744_s12 }
  0xb7   : > { %1183 = dma.done.wait (%p1732_p6), %s333_s11, 768  }
  0xb8   : > { %1185 = vsyncadd (%p1732_p6), %s333_s11, 4294966528  ;;  %s745_s13 = sshll.u32 %s1569_s4, 4  ;;  %s351_s1 = scalar_lea.sflag [#allocation10], %s332_s8 }
  0xb9   : > { %s1590_s18 = scalar_lea.vmem [#allocation8], %s745_s13  ;;  %s1592_s6 = scalar_lea.vmem [#allocation9], %s745_s13 }
  0xba   : > { %1187 = dma.done.wait (%p1732_p6), %s351_s1, 256  }
  0xbb   : > { %1189 = vsyncadd (%p1732_p6), %s351_s1, 4294967040  ;;  %p1733_p12 = scmp.eq.s32.totalorder %s1313_s26, 0 }
  0xbd   : > { %1191 = dma.done.wait (%p1733_p12), [#allocation10], 512   ;;  %p1734_p11 = pmov %p1733_p12 }
  0xbe   : > { %v400_v0 = vld [vmem:[%s1573_s15] sm:$0xff]  ;;  %v401_v1 = vld [vmem:[%s1573_s15 + $0x8] sm:$0xff]  ;;  %v402_v2 = vld [vmem:[%s1573_s15 + $0x10] sm:$0xff]  ;;  %s1735_s26 = sld [smem:[#allocation20_spill]]  ;;  %s750_s30 = sshll.u32 %s1212_s21, 3 }
  0xbf   : > { %1193 = vsyncadd (%p1734_p11), [#allocation10], 4294966784  ;;  %v812_v3 = vpack.c.bf16 %v401_v1, %v400_v0  ;;  %v403_v4 = vld [vmem:[%s1573_s15 + $0x18] sm:$0xff]  ;;  %v404_v6 = vld [vmem:[%s1573_s15 + $0x20] sm:$0xff]  ;;  %s399_s5 = scalar_lea.vmem [#allocation12], %s744_s12  ;;  %s1736_s9 = sld [smem:[#allocation21_spill]] }
  0xc0   : > { %v816_v5 = vpack.c.bf16 %v403_v4, %v402_v2  ;;  %v405_v7 = vld [vmem:[%s1573_s15 + $0x28] sm:$0xff]  ;;  %v432_v9 = vld [vmem:[#allocation11] sm:$0xff]  ;;  %v434_v10 = vld [vmem:[#allocation11 + $0x10] sm:$0xff]  ;;  %s556_s29 = sshll.u32 %s399_s5, 4  ;;  %s1737_s22 = sld [smem:[#allocation28_spill]]  ;;  %s1622_s29 = int_to_ptr.vmem [resolvable:$true] %s556_s29 }
  0xc1   : > { %813 = vmatprep.subr.bf16.mxu0 %v812_v3  ;;  %844 = vmatprep.subr.bf16.mxu1 %v812_v3  ;;  %v820_v8 = vpack.c.bf16 %v405_v7, %v404_v6  ;;  %v406_v11 = vld [vmem:[%s1573_s15 + $0x30] sm:$0xff]  ;;  %v407_v12 = vld [vmem:[%s1573_s15 + $0x38] sm:$0xff]  ;;  %v416_v14 = vld [vmem:[%s1583_s7] sm:$0xff]  ;;  %s542_s21 = scalar_lea.sflag [#allocation5], %s1569_s4  ;;  %s1118_s27 = scalar_lea.vmem %s1622_s29, 512 }
  0xc2   : > { %815 = vmatpush3.bf16.msra.mxu0 %v812_v3  ;;  %852 = vmatpush3.bf16.msra.mxu1 %v812_v3  ;;  %v824_v13 = vpack.c.bf16 %v407_v12, %v406_v11  ;;  %v417_v15 = vld [vmem:[%s1583_s7 + $0x8] sm:$0xff]  ;;  %v418_v17 = vld [vmem:[%s1583_s7 + $0x10] sm:$0xff]  ;;  %v419_v18 = vld [vmem:[%s1583_s7 + $0x18] sm:$0xff]  ;;  %p1119_p5 = scmp.ne.s32.totalorder %s1622_s29, %s1118_s27  ;;  %s1238_s15 = smov [#allocation12]  }
  0xc3   : > { %817 = vmatprep.subr.bf16.mxu0 %v816_v5  ;;  %845 = vmatprep.subr.bf16.mxu1 %v816_v5  ;;  %v828_v16 = vpack.c.bf16 %v417_v15, %v416_v14  ;;  %v832_v19 = vpack.c.bf16 %v419_v18, %v418_v17  ;;  %v424_v20 = vld [vmem:[%s1590_s18] sm:$0xff]  ;;  %v425_v21 = vld [vmem:[%s1590_s18 + $0x8] sm:$0xff]  ;;  %s1122_s8 = sshll.u32 %s1238_s15, 4  ;;  %s1123_s8 = int_to_ptr.vmem [resolvable:$false] %s1122_s8 }
  0xc4   : > { %806 = vmatprep.mubr.f32.mxu0 %v432_v9  ;;  %809 = vmatprep.mubr.f32.mxu1 %v434_v10  ;;  %v836_v22 = vpack.c.bf16 %v425_v21, %v424_v20  ;;  %v428_v23 = vld [vmem:[%s1592_s6] sm:$0xff]  ;;  %v429_v24 = vld [vmem:[%s1592_s6 + $0x8] sm:$0xff]  ;;  %s553_s10 = sadd.s32 %s1735_s26, %s750_s30  ;;  %s1124_s12 = scalar_lea.vmem %s1123_s8, 1024 }
  0xc5   : > { %v840_v25 = vpack.c.bf16 %v429_v24, %v428_v23  ;;  %v433_v26 = vld [vmem:[#allocation11 + $0x8] sm:$0xff]  ;;  %v435_v27 = vld [vmem:[#allocation11 + $0x18] sm:$0xff]  ;;  %s751_s16 = sshll.u32 %s553_s10, 7  ;;  %p1739_p0 = scmp.ne.s32.totalorder %s1736_s9, 0 }
  0xc6   : > { %819 = vmatpush3.bf16.msra.mxu0 %v816_v5  ;;  %853 = vmatpush3.bf16.msra.mxu1 %v816_v5  ;;  %s1738_s17 = smov %s1737_s22  ;;  %s1627_s14 = scalar_lea.hbm %s1737_s22, %s751_s16 }
  0xc7   : > { %821 = vmatprep.subr.bf16.mxu0 %v820_v8  ;;  %846 = vmatprep.subr.bf16.mxu1 %v820_v8  ;;  %p1120_p13 = pnand %p1119_p5, %p1739_p0  ;;  %p1125_p8 = scmp.lt.s32.totalorder %s1622_s29, %s1123_s8 }
  0xc8   : > { %p1126_p9 = scmp.lt.s32.totalorder %s1124_s12, %s1118_s27 }
  0xc9   : > { %p1121_p3 = pneg %p1120_p13 }
  0xca   : > { %823 = vmatpush3.bf16.msra.mxu0 %v820_v8  ;;  %854 = vmatpush3.bf16.msra.mxu1 %v820_v8  ;;  %p1127_p7 = por %p1126_p9, %p1125_p8 }
  0xcb   : > { %825 = vmatprep.subr.bf16.mxu0 %v824_v13  ;;  %847 = vmatprep.subr.bf16.mxu1 %v824_v13 }
  0xcc   : > { %p1128_p2 = pnand %p1127_p7, %p1121_p3 }
  0xce   : > { %827 = vmatpush3.bf16.msra.mxu0 %v824_v13  ;;  %855 = vmatpush3.bf16.msra.mxu1 %v824_v13 }
  0xcf   : > { %829 = vmatprep.subr.bf16.mxu0 %v828_v16  ;;  %848 = vmatprep.subr.bf16.mxu1 %v828_v16 }
  0xd2   : > { %831 = vmatpush3.bf16.msra.mxu0 %v828_v16  ;;  %856 = vmatpush3.bf16.msra.mxu1 %v828_v16 }
  0xd3   : > { %833 = vmatprep.subr.bf16.mxu0 %v832_v19  ;;  %849 = vmatprep.subr.bf16.mxu1 %v832_v19 }
  0xd6   : > { %835 = vmatpush3.bf16.msra.mxu0 %v832_v19  ;;  %857 = vmatpush3.bf16.msra.mxu1 %v832_v19 }
  0xd7   : > { %837 = vmatprep.subr.bf16.mxu0 %v836_v22  ;;  %850 = vmatprep.subr.bf16.mxu1 %v836_v22 }
  0xda   : > { %839 = vmatpush3.bf16.msra.mxu0 %v836_v22  ;;  %858 = vmatpush3.bf16.msra.mxu1 %v836_v22 }
  0xdb   : > { %841 = vmatprep.subr.bf16.mxu0 %v840_v25  ;;  %851 = vmatprep.subr.bf16.mxu1 %v840_v25 }
  0xde   : > { %843 = vmatpush3.bf16.msra.mxu0 %v840_v25  ;;  %859 = vmatpush3.bf16.msra.mxu1 %v840_v25 }
  0xe1   : > { %807 = vmatmul.mubr.f32.vlgmr.msra.gmra.mrb[0].mxu0 %v433_v26  ;;  %810 = vmatmul.mubr.f32.vlgmr.msra.gmra.mrb[0].mxu1 %v435_v27 }
 0x1b4   : > { %v808_v28 = vpop.f32.mrb[0].mxu0  ;;  %v811_v29 = vpop.f32.mrb[0].mxu1 }
 0x1b5   : > { %538 = vst [vmem:[%s399_s5 + $0x8] sm:$0xff] %v808_v28  ;;  %540 = vst [vmem:[%s399_s5 + $0x18] sm:$0xff] %v811_v29  ;;  %v518_v30 = vpop.f32.mrb[1].mxu0  ;;  %v528_v31 = vpop.f32.mrb[1].mxu1 }
 0x1b6   : > { %537 = vst [vmem:[%s399_s5] sm:$0xff] %v518_v30  ;;  %539 = vst [vmem:[%s399_s5 + $0x10] sm:$0xff] %v528_v31 }
 0x1b7   : > { %1131 = shalt.err (!%p1128_p2)
}
 0x1b8   : > { %s1132_s11 = scalar_lea.hbm %s1627_s14, 512  ;;  %s1136_s18 = scalar_lea.hbm %s1738_s17, 2048 }
 0x1b9   : > { %p1133_p10 = scmp.ne.s32.totalorder %s1627_s14, %s1132_s11  ;;  %p1137_p6 = scmp.lt.u32.totalorder %s1627_s14, %s1738_s17 }
 0x1ba   : > { %p1138_p12 = scmp.lt.u32.totalorder %s1136_s18, %s1132_s11  ;;  %p1140_p5 = scmp.lt.u32.totalorder %s1132_s11, %s1627_s14 }
 0x1bb   : > { %p1134_p4 = pnand %p1133_p10, %p1739_p0 }
 0x1bc   : > { %p1139_p11 = por %p1138_p12, %p1137_p6 }
 0x1bd   : > { %p1135_p1 = pneg %p1134_p4 }
 0x1be   : > { %p1141_p13 = por %p1140_p5, %p1139_p11 }
 0x1c0   : > { %p1142_p3 = pnand %p1141_p13, %p1135_p1 }
 0x1c2   : > { %1145 = shalt.err (!%p1142_p3)
}
 0x1c3   : > { %s1239_s26 = smov 128   ;;  %s1240_s30 = smov 256  }
 0x1c4   : > { %s1241_s10 = smov 8  }
 0x1c5   : > { %872 = dma.vmem_to_hbm [thread:$0]  (%p1739_p0), %s1622_s29, 512, %s1627_s14, %s542_s21, %s1239_s26, %s1240_s30, %s1241_s10  }
 0x1c6 PF: > { %s1740_s5 = sld [smem:[#allocation18_spill]]  ;;  %s1741_s16 = sld [smem:[#allocation22_spill]] }
 0x1c7   : > { %p898_p8 = scmp.ge.s32.totalorder %s1228_s25, 2 }
 0x1cc   : > { %s571_s20 = sand.u32 1, %s1740_s5   ;;  %p1742_p9 = scmp.ne.s32.totalorder %s1741_s16, 0 }
 0x1cd   : > { %s572_s28 = scalar_lea.sflag [#allocation5], %s571_s20 }
 0x1ce   : > { %p892_p7 = pnand %p898_p8, %p1742_p9 }
 0x1d0   : > { %1195 = dma.done.wait (!%p892_p7), %s572_s28, 512  }
 0x1d1   : > { %1197 = vsyncadd (!%p892_p7), %s572_s28, 4294966784  ;;  %s27_s25 = sadd.s32 1, %s1228_s25   ;;  %s1743_s22 = sld [smem:[#allocation19_spill]] }
 0x1d2   : > { %p24_p2 = scmp.ge.s32.totalorder %s27_s25, 6   ;;  %s1744_s20 = sld [smem:[#allocation25_spill]] }
 0x1d3   : > { %s1745_s4 = sld [smem:[#allocation23_spill]]  ;;  %s1746_s9 = sld [smem:[#allocation24_spill]] }
 0x1d4   : > { %s1747_s18 = smov %s1204_s19  ;;  %s1749_s21 = smov %s1220_s23 }
 0x1d5   :  { %26 = sbr.rel (!%p24_p2) target bundleno = 15 (0xf), region = 126 }
 0x1d7   : > { %s1748_s19 = smov %s1743_s22  ;;  %s1750_s22 = smov %s1224_s24 }
 0x1d9   : > { %s1751_s23 = smov %s1745_s4  ;;  %s1752_s24 = smov %s1746_s9 }
 0x1dc   :  { %577 = vsyncpa [#allocation4], 1 }
 0x1dd   :  { %579 = vsyncpa [#allocation4 + $0x1], 1 }
 0x1de   :  { %580 = vsyncpa [#allocation7], 1 }
 0x1df   :  { %582 = vsyncpa [#allocation7 + $0x1], 1 }
 0x1e0   :  { %583 = vsyncpa [#allocation10], 1 }
 0x1e1   :  { %585 = vsyncpa [#allocation10 + $0x1], 1 }
 0x1e2   :  { %586 = vsyncpa [#allocation5], 1 }
 0x1e3   :  { %588 = vsyncpa [#allocation5 + $0x1], 1 }

</bundles_post_ra>
